<compile_context>
chip_gen: v5e
topology: v5e:2x2
jax: 0.10.0
libtpu: 0.0.40
codegen_flags: <defaults>
</compile_context>

<pallas_src>
import jax
import jax.numpy as jnp
from jax.experimental import pallas as pl
from jax.experimental.pallas import tpu as pltpu


def _round_up(x, m):
    return (x + m - 1) // m * m


def value_net_kernel(x_ref, w1_ref, b1_ref, w2_ref, b2_ref, w3t_ref, b3_ref, o_ref):
    """One batch tile of the MLP, computed with batch on the lane axis.

    x_ref  : (TILE_B, D_in) f32 input rows for this tile
    w1, w2 : bf16 weights, PyTorch layout (out_features, in_features)
    b1, b2 : (H, 1) f32 columns (broadcast over lanes)
    w3t    : (H, 1) f32 (transposed final weight, used on the VPU/XLU path)
    b3     : (1, 1) f32
    o_ref  : (1, TILE_B) f32 lane-dense output row
    """
    # Layer 1: h1^T = relu(W1 @ x^T + b1) -> (H, TILE_B).
    # bf16 operands, f32 accumulation; contract last dims of both operands
    # (q @ k.T pattern) so no relayout is needed.
    x_bf16 = x_ref[...].astype(jnp.bfloat16)
    h1 = jax.lax.dot_general(
        w1_ref[...], x_bf16,
        dimension_numbers=(((1,), (1,)), ((), ())),
        preferred_element_type=jnp.float32,
    )
    h1 = jnp.maximum(h1 + b1_ref[...], 0.0)

    # Layer 2: h2^T = relu(W2 @ h1^T + b2) -> (H, TILE_B).
    h2 = jnp.dot(w2_ref[...], h1.astype(jnp.bfloat16),
                 preferred_element_type=jnp.float32)
    h2 = jnp.maximum(h2 + b2_ref[...], 0.0)

    # Layer 3 (out_features = 1): keep it off the MXU. A VPU broadcast-multiply
    # plus an XLU sublane reduce uses slack slots instead of burning MXU
    # stationary pushes for a single output row.
    out = jnp.sum(w3t_ref[...] * h2, axis=0, keepdims=True) + b3_ref[...]
    o_ref[...] = out.astype(o_ref.dtype)


def value_network_forward(state, params, *, tile_b=None):
    """state: (B, num_inputs) float32. params: PyTorch-layout dict (see init_params)."""
    B, D_in = state.shape
    H = params["w1"].shape[0]

    # --- Generation-aware tile selection -------------------------------------
    # The (tile, D_in) f32 input block lane-pads D_in up to 128 lanes, so each
    # double-buffered input buffer costs 512*tile bytes. Budget per VMEM size.
    try:
        vmem_bytes = pltpu.get_tpu_info().vmem_capacity_bytes
    except Exception:
        vmem_bytes = 64 << 20  # conservative fallback (treat like v7x)
    small_vmem = vmem_bytes <= (96 << 20)      # v7x: 64 MiB/TC; v5e/v6e: 128 MiB
    if tile_b is None:
        tile_b = 16384 if small_vmem else 32768
    # Raise the scoped VMEM limit only when the big tile actually needs it.
    vmem_limit = None if small_vmem else (64 << 20)

    # Tile is always a multiple of 128 so the (1, tile) output block stays
    # lane-dense (unmasked vst) even for tiny batches.
    tile = min(_round_up(tile_b, 128), _round_up(B, 128))
    # Give the two v7x TensorCores at least two "parallel" tiles for mid-size B.
    if pl.cdiv(B, tile) == 1 and B >= 512:
        tile = _round_up(pl.cdiv(B, 2), 128)
    grid = (pl.cdiv(B, tile),)  # ragged last block handled by Pallas (no jnp.pad)

    # Cast matmul weights to bf16 once; biases and w3 (VPU path) stay f32.
    w1 = params["w1"].astype(jnp.bfloat16)
    w2 = params["w2"].astype(jnp.bfloat16)
    w3t = params["w3"].reshape(H, 1).astype(jnp.float32)
    b1, b2, b3 = params["b1"], params["b2"], params["b3"]

    resident = lambda shape: pl.BlockSpec(shape, lambda i: (0, 0))  # stays in VMEM

    flops = 2 * B * (D_in * H + H * H + H)
    bytes_accessed = (B * D_in * 4 + B * 4            # input + output stream
                      + (H * D_in + H * H) * 2        # bf16 matmul weights
                      + (3 * H + 2) * 4)              # biases + w3

    out = pl.pallas_call(
        value_net_kernel,
        out_shape=jax.ShapeDtypeStruct((1, B), jnp.float32),
        grid=grid,
        in_specs=[
            pl.BlockSpec((tile, D_in), lambda i: (i, 0)),  # state: tiled over batch
            resident((H, D_in)),  # w1 (bf16)
            resident((H, 1)),     # b1
            resident((H, H)),     # w2 (bf16)
            resident((H, 1)),     # b2
            resident((H, 1)),     # w3^T (f32, VPU path)
            resident((1, 1)),     # b3
        ],
        out_specs=pl.BlockSpec((1, tile), lambda i: (0, i)),
        compiler_params=pltpu.CompilerParams(
            dimension_semantics=("parallel",),   # independent batch tiles
            vmem_limit_bytes=vmem_limit,
        ),
        cost_estimate=pl.CostEstimate(
            flops=flops, transcendentals=0, bytes_accessed=bytes_accessed),
    )(state, w1, b1, w2, b2, w3t, b3)

    # (1, B) lane-dense row -> (B, 1) column (same data order).
    return out.reshape(B, 1)


def xavier_uniform(key, out_features, in_features, gain=1.0, dtype=jnp.float32):
    # Matches torch.nn.init.xavier_uniform_ on an (out, in) weight.
    a = gain * (6.0 / (in_features + out_features)) ** 0.5
    return jax.random.uniform(key, (out_features, in_features), dtype=dtype,
                              minval=-a, maxval=a)


def init_params(key, num_inputs, hidden_dim):
    k1, k2, k3 = jax.random.split(key, 3)
    return {
        "w1": xavier_uniform(k1, hidden_dim, num_inputs),
        "b1": jnp.zeros((hidden_dim, 1), jnp.float32),
        "w2": xavier_uniform(k2, hidden_dim, hidden_dim),
        "b2": jnp.zeros((hidden_dim, 1), jnp.float32),
        "w3": xavier_uniform(k3, 1, hidden_dim),
        "b3": jnp.zeros((1, 1), jnp.float32),
    }


def _reference(state, params):
    # Pure-JAX f32 reference (PyTorch semantics: y = x @ W.T + b).
    h = jnp.maximum(state @ params["w1"].T + params["b1"].T, 0.0)
    h = jnp.maximum(h @ params["w2"].T + params["b2"].T, 0.0)
    return h @ params["w3"].T + params["b3"].T


if __name__ == "__main__":
    key = jax.random.PRNGKey(0)
    k_state, k_state2, k_params = jax.random.split(key, 3)

    num_inputs, hidden_dim = 16, 32
    params = init_params(k_params, num_inputs, hidden_dim)

    # Perturb biases (zero in PyTorch init) so the bias-broadcast path is tested.
    kb = jax.random.split(k_params, 4)
    params["b1"] = 0.1 * jax.random.normal(kb[1], (hidden_dim, 1), jnp.float32)
    params["b2"] = 0.1 * jax.random.normal(kb[2], (hidden_dim, 1), jnp.float32)
    params["b3"] = 0.1 * jax.random.normal(kb[3], (1, 1), jnp.float32)

    # Case 1: tiny batch (non-multiple of 8/128) -> single partial block.
    batch = 10
    state = jax.random.normal(k_state, (batch, num_inputs), dtype=jnp.float32)
    out = jax.block_until_ready(value_network_forward(state, params))
    ref = _reference(state, params)
    assert out.shape == (batch, 1)
    # bf16 matmuls -> loosened tolerance against the f32 reference.
    assert jnp.allclose(out, ref, atol=5e-2, rtol=5e-2), float(jnp.max(jnp.abs(out - ref)))

    # Case 2: mid-size batch -> multi-tile grid with a ragged last block.
    batch2 = 600
    state2 = jax.random.normal(k_state2, (batch2, num_inputs), dtype=jnp.float32)
    out2 = jax.block_until_ready(value_network_forward(state2, params))
    ref2 = _reference(state2, params)
    assert out2.shape == (batch2, 1)
    assert jnp.allclose(out2, ref2, atol=5e-2, rtol=5e-2), float(jnp.max(jnp.abs(out2 - ref2)))

    print("KERNEL_OK")
</pallas_src>

<mosaic_0001>
module attributes {stable_mosaic.version = 11 : i64} {
  func.func @value_net_kernel(%arg0: i32, %arg1: memref<128x16xf32, #tpu.memory_space<vmem>>, %arg2: memref<32x16xbf16, #tpu.memory_space<vmem>>, %arg3: memref<32x1xf32, #tpu.memory_space<vmem>>, %arg4: memref<32x32xbf16, #tpu.memory_space<vmem>>, %arg5: memref<32x1xf32, #tpu.memory_space<vmem>>, %arg6: memref<32x1xf32, #tpu.memory_space<vmem>>, %arg7: memref<1x1xf32, #tpu.memory_space<vmem>>, %arg8: memref<1x128xf32, #tpu.memory_space<vmem>>) attributes {dimension_semantics = [#tpu.dimension_semantics<parallel>], iteration_bounds = array<i64: 1>, scalar_prefetch = 0 : i64, scratch_operands = 0 : i64, tpu.core_type = #tpu.core_type<tc>, window_params = [{transform_indices = @transform_0, window_bounds = array<i64: 128, 16>}, {pipeline_mode = #tpu.pipeline_mode<synchronous>, transform_indices = @transform_1, window_bounds = array<i64: 32, 16>}, {pipeline_mode = #tpu.pipeline_mode<synchronous>, transform_indices = @transform_2, window_bounds = array<i64: 32, 1>}, {pipeline_mode = #tpu.pipeline_mode<synchronous>, transform_indices = @transform_3, window_bounds = array<i64: 32, 32>}, {pipeline_mode = #tpu.pipeline_mode<synchronous>, transform_indices = @transform_4, window_bounds = array<i64: 32, 1>}, {pipeline_mode = #tpu.pipeline_mode<synchronous>, transform_indices = @transform_5, window_bounds = array<i64: 32, 1>}, {pipeline_mode = #tpu.pipeline_mode<synchronous>, transform_indices = @transform_6, window_bounds = array<i64: 1, 1>}, {transform_indices = @transform_7, window_bounds = array<i64: 1, 128>}]} {
    %c0 = arith.constant 0 : index
    %c0_0 = arith.constant 0 : index
    %0 = vector.load %arg1[%c0, %c0_0] : memref<128x16xf32, #tpu.memory_space<vmem>>, vector<128x16xf32>
    %1 = arith.truncf %0 : vector<128x16xf32> to vector<128x16xbf16>
    %c0_1 = arith.constant 0 : index
    %c0_2 = arith.constant 0 : index
    %2 = vector.load %arg2[%c0_1, %c0_2] : memref<32x16xbf16, #tpu.memory_space<vmem>>, vector<32x16xbf16>
    %cst = arith.constant dense<0.000000e+00> : vector<32x128xf32>
    %3 = tpu.matmul %2, %1, %cst {dimension_numbers = #tpu.dot_dimension_numbers<[1], [1], [0], [0], [0, 0, 1, 0], [], []>} : vector<32x16xbf16>, vector<128x16xbf16>, vector<32x128xf32> -> vector<32x128xf32>
    %c0_3 = arith.constant 0 : index
    %c0_4 = arith.constant 0 : index
    %4 = vector.load %arg3[%c0_3, %c0_4] : memref<32x1xf32, #tpu.memory_space<vmem>>, vector<32x1xf32>
    %5 = vector.broadcast %4 : vector<32x1xf32> to vector<32x128xf32>
    %6 = arith.addf %3, %5 : vector<32x128xf32>
    %cst_5 = arith.constant 0.000000e+00 : f32
    %7 = vector.broadcast %cst_5 : f32 to vector<32x128xf32>
    %8 = arith.maximumf %6, %7 : vector<32x128xf32>
    %c0_6 = arith.constant 0 : index
    %c0_7 = arith.constant 0 : index
    %9 = vector.load %arg4[%c0_6, %c0_7] : memref<32x32xbf16, #tpu.memory_space<vmem>>, vector<32x32xbf16>
    %10 = arith.truncf %8 : vector<32x128xf32> to vector<32x128xbf16>
    %cst_8 = arith.constant dense<0.000000e+00> : vector<32x128xf32>
    %11 = tpu.matmul %9, %10, %cst_8 {dimension_numbers = #tpu.dot_dimension_numbers<[1], [0], [0], [1], [0, 0, 1, 1], [], []>} : vector<32x32xbf16>, vector<32x128xbf16>, vector<32x128xf32> -> vector<32x128xf32>
    %c0_9 = arith.constant 0 : index
    %c0_10 = arith.constant 0 : index
    %12 = vector.load %arg5[%c0_9, %c0_10] : memref<32x1xf32, #tpu.memory_space<vmem>>, vector<32x1xf32>
    %13 = vector.broadcast %12 : vector<32x1xf32> to vector<32x128xf32>
    %14 = arith.addf %11, %13 : vector<32x128xf32>
    %cst_11 = arith.constant 0.000000e+00 : f32
    %15 = vector.broadcast %cst_11 : f32 to vector<32x128xf32>
    %16 = arith.maximumf %14, %15 : vector<32x128xf32>
    %c0_12 = arith.constant 0 : index
    %c0_13 = arith.constant 0 : index
    %17 = vector.load %arg6[%c0_12, %c0_13] : memref<32x1xf32, #tpu.memory_space<vmem>>, vector<32x1xf32>
    %18 = vector.broadcast %17 : vector<32x1xf32> to vector<32x128xf32>
    %19 = arith.mulf %18, %16 : vector<32x128xf32>
    %cst_14 = arith.constant dense<0.000000e+00> : vector<128xf32>
    %20 = vector.multi_reduction <add>, %19, %cst_14 [0] : vector<32x128xf32> to vector<128xf32>
    %21 = vector.shape_cast %20 : vector<128xf32> to vector<1x128xf32>
    %c0_15 = arith.constant 0 : index
    %c0_16 = arith.constant 0 : index
    %22 = vector.load %arg7[%c0_15, %c0_16] : memref<1x1xf32, #tpu.memory_space<vmem>>, vector<1x1xf32>
    %23 = vector.broadcast %22 : vector<1x1xf32> to vector<1x128xf32>
    %24 = arith.addf %21, %23 : vector<1x128xf32>
    %c0_17 = arith.constant 0 : index
    %c0_18 = arith.constant 0 : index
    %25 = vector.load %arg8[%c0_17, %c0_18] : memref<1x128xf32, #tpu.memory_space<vmem>>, vector<1x128xf32>
    tpu.vector_store %arg8[%c0_17, %c0_18], %24 {strides = array<i32>} : memref<1x128xf32, #tpu.memory_space<vmem>>, vector<1x128xf32>,
    return
  }
  func.func @transform_0(%arg0: i32) -> (i32, i32) {
    %c0_i32 = arith.constant 0 : i32
    %c0_i32_0 = arith.constant 0 : i32
    return %arg0, %c0_i32 : i32, i32
  }
  func.func @transform_1(%arg0: i32) -> (i32, i32) {
    %c0_i32 = arith.constant 0 : i32
    %c0_i32_0 = arith.constant 0 : i32
    %c0_i32_1 = arith.constant 0 : i32
    return %c0_i32, %c0_i32_0 : i32, i32
  }
  func.func @transform_2(%arg0: i32) -> (i32, i32) {
    %c0_i32 = arith.constant 0 : i32
    %c0_i32_0 = arith.constant 0 : i32
    %c0_i32_1 = arith.constant 0 : i32
    return %c0_i32, %c0_i32_0 : i32, i32
  }
  func.func @transform_3(%arg0: i32) -> (i32, i32) {
    %c0_i32 = arith.constant 0 : i32
    %c0_i32_0 = arith.constant 0 : i32
    %c0_i32_1 = arith.constant 0 : i32
    return %c0_i32, %c0_i32_0 : i32, i32
  }
  func.func @transform_4(%arg0: i32) -> (i32, i32) {
    %c0_i32 = arith.constant 0 : i32
    %c0_i32_0 = arith.constant 0 : i32
    %c0_i32_1 = arith.constant 0 : i32
    return %c0_i32, %c0_i32_0 : i32, i32
  }
  func.func @transform_5(%arg0: i32) -> (i32, i32) {
    %c0_i32 = arith.constant 0 : i32
    %c0_i32_0 = arith.constant 0 : i32
    %c0_i32_1 = arith.constant 0 : i32
    return %c0_i32, %c0_i32_0 : i32, i32
  }
  func.func @transform_6(%arg0: i32) -> (i32, i32) {
    %c0_i32 = arith.constant 0 : i32
    %c0_i32_0 = arith.constant 0 : i32
    %c0_i32_1 = arith.constant 0 : i32
    return %c0_i32, %c0_i32_0 : i32, i32
  }
  func.func @transform_7(%arg0: i32) -> (i32, i32) {
    %c0_i32 = arith.constant 0 : i32
    %c0_i32_0 = arith.constant 0 : i32
    return %c0_i32, %arg0 : i32, i32
  }
}

</mosaic_0001>

<bundles_post_ra>
// kernel: tpu_custom_call.1
= control target key start
LH: loop header
LB: loop body
LE: loop exit
PB: predicated region body
PF: predicated region fallthrough
CT: control target
= control target key end

     0   :  { %s495_s0 = inlined_call_operand.vmem [shape: f32[10,16], index: 0, kind: input, shape index: {}]   ;;  %s496_s1 = inlined_call_operand.vmem [shape: bf16[32,16], index: 1, kind: input, shape index: {}]   ;;  %s497_s2 = inlined_call_operand.vmem [shape: f32[32,1], index: 2, kind: input, shape index: {}]   ;;  %s498_s3 = inlined_call_operand.vmem [shape: bf16[32,32], index: 3, kind: input, shape index: {}]   ;;  %s499_s4 = inlined_call_operand.vmem [shape: f32[32,1], index: 4, kind: input, shape index: {}]   ;;  %s500_s5 = inlined_call_operand.vmem [shape: f32[32,1], index: 5, kind: input, shape index: {}]   ;;  %s501_s6 = inlined_call_operand.<no memory space> [shape: f32[1,1], index: 6, kind: input, shape index: {}]   ;;  %s502_s7 = inlined_call_operand.hbm [shape: f32[1,10], index: 7, kind: output, shape index: {}]  }
   0x1   :  { %v12_v0 = vstv %s501_s6 }
   0x2   :  { %13 = vst [vmem:[#allocation2] sm:$0x1] %v12_v0 }
   0x3   :  { %v44_v1 = vld [vmem:[%s495_s0 + $0x70] sm:$0xff]  ;;  %v45_v2 = vld [vmem:[%s495_s0 + $0x78] sm:$0xff]  ;;  %vm92_vm0 = vcmask 130048   ;;  %v42_v4 = vld [vmem:[%s495_s0 + $0x60] sm:$0xff] }
   0x4   :  { %v53_v3 = vpack.c.bf16 %v45_v2, %v44_v1  ;;  %v43_v5 = vld [vmem:[%s495_s0 + $0x68] sm:$0xff] }
   0x6   :  { %v121_v6 = vsel %vm92_vm0, %v53_v3, 0 }
   0x7   :  { %14 = vsyncpa [#allocation4], 0  ;;  %302 = vmatpush.bf16.xpose.msra.mxu2 %v121_v6  ;;  %123 = vmatpush.bf16.xpose.msra.mxu0 %v121_v6  ;;  %v52_v7 = vpack.c.bf16 %v43_v5, %v42_v4  ;;  %v40_v9 = vld [vmem:[%s495_s0 + $0x50] sm:$0xff]  ;;  %v41_v10 = vld [vmem:[%s495_s0 + $0x58] sm:$0xff]  ;;  %v341_v13 = vmov 0   ;;  %vm186_vm1 = vcmask 261120  }
   0x8   :  { %v60_v11 = vld [vmem:[%s497_s2 + $0x10] sm:$0xff]  ;;  %v51_v12 = vpack.c.bf16 %v41_v10, %v40_v9  ;;  %312 = vset.pattern.permute.xlu0 %v341_v13  ;;  %313 = vset.pattern.permute.xlu1 %v341_v13  ;;  %v38_v15 = vld [vmem:[%s495_s0 + $0x40] sm:$0xff]  ;;  %v39_v16 = vld [vmem:[%s495_s0 + $0x48] sm:$0xff]  ;;  %s269_s16 = sshll.u32 %s502_s7, 4  ;;  %s270_s16 = int_to_ptr.hbm [resolvable:$true] %s269_s16 }
   0x9   :  { %v118_v8 = vsel %vm92_vm0, %v52_v7, 0  ;;  %74 = vperm.xlu0 %312, %v60_v11   ;;  %314 = vset.pattern.permute.xlu2 %v341_v13  ;;  %v61_v17 = vld [vmem:[%s497_s2 + $0x18] sm:$0xff]  ;;  %v50_v18 = vpack.c.bf16 %v39_v16, %v38_v15  ;;  %v36_v20 = vld [vmem:[%s495_s0 + $0x30] sm:$0xff]  ;;  %v58_v22 = vld [vmem:[%s497_s2] sm:$0xff] }
   0xa   :  { %v115_v14 = vsel %vm92_vm0, %v51_v12, 0  ;;  %v37_v21 = vld [vmem:[%s495_s0 + $0x38] sm:$0xff]  ;;  %64 = vperm.xlu1 %313, %v58_v22   ;;  %v34_v25 = vld [vmem:[%s495_s0 + $0x20] sm:$0xff]  ;;  %v35_v26 = vld [vmem:[%s495_s0 + $0x28] sm:$0xff] }
   0xb   :  { %v112_v19 = vsel %vm92_vm0, %v50_v18, 0  ;;  %v49_v23 = vpack.c.bf16 %v37_v21, %v36_v20  ;;  %v154_v27 = vld [vmem:[%s499_s4 + $0x10] sm:$0xff]  ;;  %v59_v28 = vld [vmem:[%s497_s2 + $0x8] sm:$0xff]  ;;  %v48_v29 = vpack.c.bf16 %v35_v26, %v34_v25  ;;  %v33_v32 = vld [vmem:[%s495_s0 + $0x18] sm:$0xff] }
   0xc   :  { %v32_v31 = vld [vmem:[%s495_s0 + $0x10] sm:$0xff]  ;;  %v217_v33 = vld [vmem:[%s500_s5 + $0x8] sm:$0xff]  ;;  %v155_v34 = vld [vmem:[%s499_s4 + $0x18] sm:$0xff] }
   0xd   :  { %v109_v24 = vsel %vm92_vm0, %v49_v23, 0  ;;  %v106_v30 = vsel %vm92_vm0, %v48_v29, 0  ;;  %v47_v35 = vpack.c.bf16 %v33_v32, %v32_v31  ;;  %v30_v37 = vld [vmem:[%s495_s0] sm:$0xff]  ;;  %v31_v38 = vld [vmem:[%s495_s0 + $0x8] sm:$0xff]  ;;  %v218_v40 = vld [vmem:[%s500_s5 + $0x10] sm:$0xff] }
   0xe   :  { %v253_v39 = vld [vmem:[#allocation2] sm:$0x1]  ;;  %v46_v41 = vpack.c.bf16 %v31_v38, %v30_v37  ;;  %v299_v43 = vld [vmem:[%s496_s1 + $0x8] sm:$0xff]  ;;  %v219_v3 = vld [vmem:[%s500_s5 + $0x18] sm:$0xff] }
   0xf   :  { %303 = vmatpush.bf16.xpose.msra.mxu2 %v118_v8  ;;  %124 = vmatpush.bf16.xpose.msra.mxu0 %v118_v8  ;;  %v103_v36 = vsel %vm92_vm0, %v47_v35, 0  ;;  %v298_v44 = vld [vmem:[%s496_s1] sm:$0xff]  ;;  %v153_v51 = vld [vmem:[%s499_s4 + $0x8] sm:$0xff] }
  0x10   :  { %v100_v42 = vsel %vm92_vm0, %v46_v41, 0  ;;  %v152_v45 = vld [vmem:[%s499_s4] sm:$0xff]  ;;  %v301_v4 = vld [vmem:[%s498_s3 + $0x8] sm:$0xff] }
  0x11   :  { %79 = vperm.xlu0 %312, %v61_v17   ;;  %158 = vperm.xlu2 %314, %v152_v45   ;;  %v216_v61 = vld [vmem:[%s500_s5] sm:$0xff] }
  0x12   :  { %69 = vperm.xlu1 %313, %v59_v28   ;;  %v300_v2 = vld [vmem:[%s498_s3] sm:$0xff]  ;;  %s342_s3 = smov [#allocation3]  }
  0x13   :  { %s267_s5 = sshll.u32 %s342_s3, 4  ;;  %s268_s5 = int_to_ptr.vmem [resolvable:$true] %s267_s5 }
  0x17   :  { %304 = vmatpush.bf16.xpose.msra.mxu2 %v115_v14  ;;  %125 = vmatpush.bf16.xpose.msra.mxu0 %v115_v14 }
  0x19   :  { %168 = vperm.xlu0 %312, %v154_v27   ;;  %163 = vperm.xlu2 %314, %v153_v51  }
  0x1a   :  { %173 = vperm.xlu1 %313, %v155_v34  }
  0x1f   :  { %305 = vmatpush.bf16.xpose.msra.mxu2 %v112_v19  ;;  %126 = vmatpush.bf16.xpose.msra.mxu0 %v112_v19 }
  0x21   :  { %227 = vperm.xlu0 %312, %v217_v33   ;;  %222 = vperm.xlu2 %314, %v216_v61  }
  0x22   :  { %232 = vperm.xlu1 %313, %v218_v40  }
  0x27   :  { %306 = vmatpush.bf16.xpose.msra.mxu2 %v109_v24  ;;  %127 = vmatpush.bf16.xpose.msra.mxu0 %v109_v24 }
  0x29   :  { %256 = vperm.xlu0 %312, %v253_v39   ;;  %237 = vperm.xlu2 %314, %v219_v3  }
  0x2f   :  { %307 = vmatpush.bf16.xpose.msra.mxu2 %v106_v30  ;;  %128 = vmatpush.bf16.xpose.msra.mxu0 %v106_v30 }
  0x37   :  { %308 = vmatpush.bf16.xpose.msra.mxu2 %v103_v36  ;;  %129 = vmatpush.bf16.xpose.msra.mxu0 %v103_v36 }
  0x3f   :  { %309 = vmatpush.bf16.xpose.msra.mxu2 %v100_v42  ;;  %130 = vmatpush.bf16.xpose.msra.mxu0 %v100_v42 }
  0x46   :  { %287 = vmatmul.msk.bf16.vlgmr.msra.gmra.mxu2 %vm92_vm0, %v299_v43  ;;  %286 = vmatmul.msk.bf16.vlgmr.msra.gmra.mxu0 %vm92_vm0, %v298_v44 }
  0x6b   :  { %v159_v5 = vpop.permute.xlu2 %158 }
  0x73   :  { %v164_v7 = vpop.permute.xlu2 %163 }
  0x7b   :  { %v75_v47 = vpop.permute.xlu0 %74  ;;  %v223_v15 = vpop.permute.xlu2 %222 }
  0x7c   :  { %v65_v48 = vpop.permute.xlu1 %64 }
  0x83   :  { %v80_v52 = vpop.permute.xlu0 %79  ;;  %v238_v28 = vpop.permute.xlu2 %237 }
  0x84   :  { %v70_v54 = vpop.permute.xlu1 %69 }
  0x8b   :  { %v169_v9 = vpop.permute.xlu0 %168 }
  0x8c   :  { %v174_v10 = vpop.permute.xlu1 %173 }
  0x93   :  { %v228_v19 = vpop.permute.xlu0 %227 }
  0x94   :  { %v233_v21 = vpop.permute.xlu1 %232 }
  0x9b   :  { %v257_v36 = vpop.permute.xlu0 %256 }
  0x9c   :  { %v259_v38 = vperm.slane %v257_v36, 0 }
  0xc3   :  { %v132_v46 = vpop.f32.mrf.mxu0 }
  0xc4   :  { %v133_v56 = vadd.f32 %v132_v46, %v65_v48 }
  0xc6   :  { %v142_v62 = vmax.f32 %v133_v56, 0.0 }
  0xc9   :  { %v137_v49 = vpop.f32.mrf.mxu2 }
  0xca   :  { %v138_v53 = vadd.f32 %v137_v49, %v75_v47 }
  0xcb   :  { %v134_v50 = vpop.f32.mrf.mxu0 }
  0xcc   :  { %v135_v57 = vadd.f32 %v134_v50, %v70_v54  ;;  %v144_v59 = vmax.f32 %v138_v53, 0.0 }
  0xce   :  { %v143_v63 = vmax.f32 %v135_v57, 0.0 }
  0xd0   :  { %v150_v1 = vpack.c.bf16 %v143_v63, %v142_v62 }
  0xd1   :  { %v139_v55 = vpop.f32.mrf.mxu2 }
  0xd2   :  { %v140_v58 = vadd.f32 %v139_v55, %v80_v52 }
  0xd4   :  { %v145_v60 = vmax.f32 %v140_v58, 0.0 }
  0xd6   :  { %v151_v0 = vpack.c.bf16 %v145_v60, %v144_v59 }
  0xd8   :  { %199 = vmatpush.bf16.msra.mxu1 %v151_v0 }
  0xdc   :  { %200 = vmatpush.bf16.msra.mxu1 %v150_v1 }
  0xdf   :  { %296 = vmatmul.msk.bf16.vlgmr.msra.gmra.mxu1 %vm186_vm1, %v300_v2 }
  0xef   :  { %297 = vmatmul.msk.bf16.gmra.mxu1 %vm186_vm1, %v301_v4 }
 0x15c   :  { %v202_v6 = vpop.f32.mrf.mxu1 }
 0x15d   :  { %v203_v13 = vadd.f32 %v202_v6, %v159_v5 }
 0x15f   :  { %v212_v17 = vmax.f32 %v203_v13, 0.0 }
 0x161   :  { %v240_v23 = vmul.f32 %v223_v15, %v212_v17 }
 0x164   :  { %v204_v8 = vpop.f32.mrf.mxu1 }
 0x165   :  { %v205_v11 = vadd.f32 %v204_v8, %v164_v7 }
 0x167   :  { %v213_v16 = vmax.f32 %v205_v11, 0.0 }
 0x169   :  { %v241_v20 = vmul.f32 %v228_v19, %v213_v16 }
 0x16b   :  { %v244_v26 = vadd.f32 %v241_v20, %v240_v23 }
 0x16c   :  { %v207_v12 = vpop.f32.mrf.mxu1 }
 0x16d   :  { %v208_v14 = vadd.f32 %v207_v12, %v169_v9 }
 0x16f   :  { %v214_v18 = vmax.f32 %v208_v14, 0.0 }
 0x171   :  { %v242_v24 = vmul.f32 %v233_v21, %v214_v18 }
 0x173   :  { %v245_v29 = vadd.f32 %v244_v26, %v242_v24 }
 0x174   :  { %v209_v22 = vpop.f32.mrf.mxu1 }
 0x175   :  { %v210_v25 = vadd.f32 %v209_v22, %v174_v10 }
 0x177   :  { %v215_v27 = vmax.f32 %v210_v25, 0.0 }
 0x179   :  { %v243_v30 = vmul.f32 %v238_v28, %v215_v27 }
 0x17b   :  { %v246_v31 = vadd.f32 %v245_v29, %v243_v30 }
 0x17d   :  { %v247_v32 = vrot.slane %v246_v31, 4 }
 0x17f   :  { %v248_v33 = vadd.f32 %v247_v32, %v246_v31 }
 0x181   :  { %v249_v34 = vrot.slane %v248_v33, 2 }
 0x183   :  { %v250_v35 = vadd.f32 %v249_v34, %v248_v33 }
 0x185   :  { %v251_v37 = vrot.slane %v250_v35, 1 }
 0x187   :  { %v252_v39 = vadd.f32 %v251_v37, %v250_v35 }
 0x189   :  { %v260_v40 = vadd.f32 %v259_v38, %v252_v39 }
 0x18b   :  { %261 = vst [vmem:[#allocation3] sm:$0x1] %v260_v40 }
 0x18c   :  { %272 = dma.vmem_to_hbm [thread:$0]  %s268_s5, 16, %s270_s16, [#allocation4]  }
 0x18d   :  { %339 = dma.done.wait [#allocation4], 16  }
 0x18e   :  { %340 = vsyncadd [#allocation4], 4294967280 }
 0x18f   :  { %277 = vsyncpa [#allocation4], 1 }

</bundles_post_ra>
